<compile_context>
chip_gen: v5e
topology: v5e:2x2
jax: 0.10.0
libtpu: 0.0.40
codegen_flags: <defaults>
</compile_context>

<pallas_src>
import jax
import jax.numpy as jnp
from jax.experimental import pallas as pl
from jax.experimental.pallas import tpu as pltpu


def scorer_kernel(sf_ref, x_ref, w1a_ref, w1b_ref, b1_ref, w2_ref, out_ref):
    # sf_ref: (R, 2T)  x_ref: (R, 64)  w1a_ref: (2T, H)  w1b_ref: (64, H)
    # b1_ref: (1, H)   w2_ref: (1, H)  out_ref: (1, 1, R)
    h = (jnp.dot(sf_ref[...], w1a_ref[...], preferred_element_type=jnp.float32)
         + jnp.dot(x_ref[...], w1b_ref[...], preferred_element_type=jnp.float32)
         + b1_ref[...])                                              # (R, H) f32

    # F.layer_norm over the last dim (eps=1e-5, no learnable affine),
    # one pass over h via var = E[h^2] - mu^2; rsqrt runs on the EUP.
    inv_h = 1.0 / h.shape[-1]
    mu = jnp.sum(h, axis=-1, keepdims=True) * inv_h
    ms = jnp.sum(h * h, axis=-1, keepdims=True) * inv_h
    var = ms - mu * mu
    hn = (h - mu) * jax.lax.rsqrt(var + 1e-5)

    # relu
    hr = jnp.maximum(hn, 0.0)

    # fc2 (H -> 1) as VPU multiply + lane reduce (avoids an N=1 MXU matmul).
    # Result is a lane-dense (R,) logit vector; fc2 bias is added in the wrapper.
    out_ref[0, 0, :] = jnp.sum(hr * w2_ref[...], axis=-1)


def _round_up(n, m):
    return ((n + m - 1) // m) * m


def trajectory_scorer(s_F, x, w1, b1, w2, b2, *, block_rows=2048):
    """Forward pass of Trajectory_Scorer.

    s_F: (bs, M, T, 2)   x: (bs, M, 64)
    w1: (2T+64, H)  b1: (H,)  w2: (H, 1)  b2: (1,)
    returns phi_x: (bs, M) float32 (softmax over M).
    """
    bs, M, T, two = s_F.shape
    assert two == 2 and x.shape[0] == bs and x.shape[1] == M
    c_traj = 2 * T
    c_agent = x.shape[-1]
    H = w1.shape[1]
    assert w1.shape[0] == c_traj + c_agent

    # Row-flatten both feature streams (free reshapes on contiguous data).
    N = bs * M
    sf_rows = s_F.reshape(N, c_traj)
    x_rows = x.reshape(N, c_agent)

    # Row-block size: multiple of 8, ~block_rows, and >=2 grid steps when the
    # problem allows (so the parallel grid axis can shard across v7x's 2 TCs).
    R = min(block_rows, _round_up(N, 8))
    if N >= 16:
        R = min(R, _round_up(pl.cdiv(N, 2), 8))
    R = max(8, _round_up(R, 8))
    nb = pl.cdiv(N, R)        # edge block is padded by Pallas; extra rows sliced off

    # Split fc weight to match the two feature streams; matmul dtype follows the
    # feature dtype (pass bf16 features for the HBM-bandwidth win). Elementwise
    # math stays in f32 (b1 / w2 kept f32, f32 matmul accumulation).
    w1a = w1[:c_traj].astype(sf_rows.dtype)
    w1b = w1[c_traj:].astype(x_rows.dtype)
    b1_row = b1.reshape(1, H).astype(jnp.float32)
    w2_row = w2.reshape(1, H).astype(jnp.float32)

    logits = pl.pallas_call(
        scorer_kernel,
        out_shape=jax.ShapeDtypeStruct((nb, 1, R), jnp.float32),
        grid_spec=pltpu.PrefetchScalarGridSpec(
            num_scalar_prefetch=0,
            grid=(nb,),
            in_specs=[
                pl.BlockSpec((R, c_traj), lambda i: (i, 0)),    # trajectory rows
                pl.BlockSpec((R, c_agent), lambda i: (i, 0)),   # agent-feature rows
                pl.BlockSpec((c_traj, H), lambda i: (0, 0)),    # fc weight (traj part)
                pl.BlockSpec((c_agent, H), lambda i: (0, 0)),   # fc weight (agent part)
                pl.BlockSpec((1, H), lambda i: (0, 0)),         # fc bias
                pl.BlockSpec((1, H), lambda i: (0, 0)),         # fc2 weight as a row
            ],
            out_specs=pl.BlockSpec((1, 1, R), lambda i: (i, 0, 0)),
        ),
        compiler_params=pltpu.CompilerParams(
            dimension_semantics=("parallel",)),
    )(sf_rows, x_rows, w1a, w1b, b1_row, w2_row)

    g = logits.reshape(nb * R)[:N].reshape(bs, M)
    # fc2 bias (constant shift, exact no-op under softmax) + softmax over the M
    # candidates, done in the wrapper where XLA fuses it; keeps the kernel's
    # output lane-dense.
    g = g + jnp.reshape(b2.astype(jnp.float32), ())
    return jax.nn.softmax(g, axis=-1)


def reference(s_F, x, w1, b1, w2, b2):
    bs, M, T, _ = s_F.shape
    feat = jnp.concatenate([s_F.reshape(bs, M, 2 * T), x], axis=-1)
    h = feat @ w1 + b1
    mu = jnp.mean(h, axis=-1, keepdims=True)
    var = jnp.mean(jnp.square(h - mu), axis=-1, keepdims=True)
    hn = (h - mu) * jax.lax.rsqrt(var + 1e-5)
    hr = jnp.maximum(hn, 0.0)
    g = (hr @ w2 + b2)[..., 0]
    return jax.nn.softmax(g, axis=-1)


def _make_problem(key, bs, M, T, f_agent, hidden):
    k_sF, k_x, k_w1, k_b1, k_w2, k_b2 = jax.random.split(key, 6)
    C = 2 * T + f_agent
    s_F = jax.random.normal(k_sF, (bs, M, T, 2), dtype=jnp.float32)
    x = jax.random.normal(k_x, (bs, M, f_agent), dtype=jnp.float32)
    # Synthetic weights in (in, out) layout so the kernel computes x @ W + b.
    w1 = jax.random.normal(k_w1, (C, hidden), dtype=jnp.float32) / jnp.sqrt(C)
    b1 = jax.random.normal(k_b1, (hidden,), dtype=jnp.float32) * 0.01
    w2 = jax.random.normal(k_w2, (hidden, 1), dtype=jnp.float32) / jnp.sqrt(hidden)
    b2 = jax.random.normal(k_b2, (1,), dtype=jnp.float32) * 0.01
    return s_F, x, w1, b1, w2, b2


if __name__ == "__main__":
    key = jax.random.PRNGKey(0)
    k1, k2 = jax.random.split(key)

    # Small deterministic problem: bs=2, M=16 candidates, T=8 steps, 64 agent
    # features -> C = 80, hidden = 32. Grid has 2 row-blocks of 16 rows.
    s_F, x, w1, b1, w2, b2 = _make_problem(k1, bs=2, M=16, T=8, f_agent=64, hidden=32)
    phi = jax.block_until_ready(trajectory_scorer(s_F, x, w1, b1, w2, b2))
    ref = reference(s_F, x, w1, b1, w2, b2)
    assert phi.shape == (2, 16)
    assert jnp.allclose(jnp.sum(phi, axis=-1), 1.0, atol=1e-5)
    assert jnp.allclose(phi, ref, atol=1e-4, rtol=1e-4)

    # Module-default shapes: input_channels = 102 = 2*19 + 64, hidden = 64, M = 50
    # (exercises a padded edge row-block: 100 rows tiled in blocks of 56).
    s_F2, x2, w12, b12, w22, b22 = _make_problem(k2, bs=2, M=50, T=19, f_agent=64,
                                                 hidden=64)
    phi2 = jax.block_until_ready(trajectory_scorer(s_F2, x2, w12, b12, w22, b22))
    ref2 = reference(s_F2, x2, w12, b12, w22, b22)
    assert phi2.shape == (2, 50)
    assert jnp.allclose(jnp.sum(phi2, axis=-1), 1.0, atol=1e-5)
    assert jnp.allclose(phi2, ref2, atol=1e-4, rtol=1e-4)

    # bf16 feature streams (recommended on v5e/v6e/v7x for HBM bandwidth):
    # matmul inputs in bf16, f32 accumulation, f32 layer_norm/relu/softmax.
    phi_bf16 = jax.block_until_ready(
        trajectory_scorer(s_F.astype(jnp.bfloat16), x.astype(jnp.bfloat16),
                          w1, b1, w2, b2))
    assert phi_bf16.shape == (2, 16)
    assert jnp.allclose(phi_bf16, ref, atol=2e-2)

    print("KERNEL_OK")
</pallas_src>

<mosaic_0001>
module attributes {stable_mosaic.version = 11 : i64} {
  func.func @scorer_kernel(%arg0: i32, %arg1: memref<16x16xf32, #tpu.memory_space<vmem>>, %arg2: memref<16x64xf32, #tpu.memory_space<vmem>>, %arg3: memref<16x32xf32, #tpu.memory_space<vmem>>, %arg4: memref<64x32xf32, #tpu.memory_space<vmem>>, %arg5: memref<1x32xf32, #tpu.memory_space<vmem>>, %arg6: memref<1x32xf32, #tpu.memory_space<vmem>>, %arg7: memref<1x1x16xf32, #tpu.memory_space<vmem>>) attributes {dimension_semantics = [#tpu.dimension_semantics<parallel>], iteration_bounds = array<i64: 2>, scalar_prefetch = 0 : i64, scratch_operands = 0 : i64, tpu.core_type = #tpu.core_type<tc>, window_params = [{transform_indices = @transform_0, window_bounds = array<i64: 16, 16>}, {transform_indices = @transform_1, window_bounds = array<i64: 16, 64>}, {pipeline_mode = #tpu.pipeline_mode<synchronous>, transform_indices = @transform_2, window_bounds = array<i64: 16, 32>}, {pipeline_mode = #tpu.pipeline_mode<synchronous>, transform_indices = @transform_3, window_bounds = array<i64: 64, 32>}, {pipeline_mode = #tpu.pipeline_mode<synchronous>, transform_indices = @transform_4, window_bounds = array<i64: 1, 32>}, {pipeline_mode = #tpu.pipeline_mode<synchronous>, transform_indices = @transform_5, window_bounds = array<i64: 1, 32>}, {transform_indices = @transform_6, window_bounds = array<i64: 1, 1, 16>}]} {
    %c0 = arith.constant 0 : index
    %c0_0 = arith.constant 0 : index
    %0 = vector.load %arg1[%c0, %c0_0] : memref<16x16xf32, #tpu.memory_space<vmem>>, vector<16x16xf32>
    %c0_1 = arith.constant 0 : index
    %c0_2 = arith.constant 0 : index
    %1 = vector.load %arg3[%c0_1, %c0_2] : memref<16x32xf32, #tpu.memory_space<vmem>>, vector<16x32xf32>
    %cst = arith.constant dense<0.000000e+00> : vector<16x32xf32>
    %2 = tpu.matmul %0, %1, %cst {dimension_numbers = #tpu.dot_dimension_numbers<[1], [0], [0], [1], [0, 0, 1, 1], [], []>} : vector<16x16xf32>, vector<16x32xf32>, vector<16x32xf32> -> vector<16x32xf32>
    %c0_3 = arith.constant 0 : index
    %c0_4 = arith.constant 0 : index
    %3 = vector.load %arg2[%c0_3, %c0_4] : memref<16x64xf32, #tpu.memory_space<vmem>>, vector<16x64xf32>
    %c0_5 = arith.constant 0 : index
    %c0_6 = arith.constant 0 : index
    %4 = vector.load %arg4[%c0_5, %c0_6] : memref<64x32xf32, #tpu.memory_space<vmem>>, vector<64x32xf32>
    %cst_7 = arith.constant dense<0.000000e+00> : vector<16x32xf32>
    %5 = tpu.matmul %3, %4, %cst_7 {dimension_numbers = #tpu.dot_dimension_numbers<[1], [0], [0], [1], [0, 0, 1, 1], [], []>} : vector<16x64xf32>, vector<64x32xf32>, vector<16x32xf32> -> vector<16x32xf32>
    %6 = arith.addf %2, %5 : vector<16x32xf32>
    %c0_8 = arith.constant 0 : index
    %c0_9 = arith.constant 0 : index
    %7 = vector.load %arg5[%c0_8, %c0_9] : memref<1x32xf32, #tpu.memory_space<vmem>>, vector<1x32xf32>
    %8 = vector.broadcast %7 : vector<1x32xf32> to vector<16x32xf32>
    %9 = arith.addf %6, %8 : vector<16x32xf32>
    %cst_10 = arith.constant dense<0.000000e+00> : vector<16xf32>
    %10 = vector.multi_reduction <add>, %9, %cst_10 [1] : vector<16x32xf32> to vector<16xf32>
    %11 = vector.shape_cast %10 : vector<16xf32> to vector<16x1xf32>
    %cst_11 = arith.constant 3.125000e-02 : f32
    %12 = vector.broadcast %cst_11 : f32 to vector<16x1xf32>
    %13 = arith.mulf %11, %12 : vector<16x1xf32>
    %14 = arith.mulf %9, %9 : vector<16x32xf32>
    %cst_12 = arith.constant dense<0.000000e+00> : vector<16xf32>
    %15 = vector.multi_reduction <add>, %14, %cst_12 [1] : vector<16x32xf32> to vector<16xf32>
    %16 = vector.shape_cast %15 : vector<16xf32> to vector<16x1xf32>
    %cst_13 = arith.constant 3.125000e-02 : f32
    %17 = vector.broadcast %cst_13 : f32 to vector<16x1xf32>
    %18 = arith.mulf %16, %17 : vector<16x1xf32>
    %19 = arith.mulf %13, %13 : vector<16x1xf32>
    %20 = arith.subf %18, %19 : vector<16x1xf32>
    %21 = vector.broadcast %13 : vector<16x1xf32> to vector<16x32xf32>
    %22 = arith.subf %9, %21 : vector<16x32xf32>
    %cst_14 = arith.constant 9.99999974E-6 : f32
    %23 = vector.broadcast %cst_14 : f32 to vector<16x1xf32>
    %24 = arith.addf %20, %23 : vector<16x1xf32>
    %25 = math.rsqrt %24 : vector<16x1xf32>
    %26 = vector.broadcast %25 : vector<16x1xf32> to vector<16x32xf32>
    %27 = arith.mulf %22, %26 : vector<16x32xf32>
    %cst_15 = arith.constant 0.000000e+00 : f32
    %28 = vector.broadcast %cst_15 : f32 to vector<16x32xf32>
    %29 = arith.maximumf %27, %28 : vector<16x32xf32>
    %c0_16 = arith.constant 0 : index
    %c0_17 = arith.constant 0 : index
    %30 = vector.load %arg6[%c0_16, %c0_17] : memref<1x32xf32, #tpu.memory_space<vmem>>, vector<1x32xf32>
    %31 = vector.broadcast %30 : vector<1x32xf32> to vector<16x32xf32>
    %32 = arith.mulf %29, %31 : vector<16x32xf32>
    %cst_18 = arith.constant dense<0.000000e+00> : vector<16xf32>
    %33 = vector.multi_reduction <add>, %32, %cst_18 [1] : vector<16x32xf32> to vector<16xf32>
    %c0_19 = arith.constant 0 : index
    %c0_20 = arith.constant 0 : index
    %c0_21 = arith.constant 0 : index
    %34 = vector.load %arg7[%c0_19, %c0_20, %c0_21] : memref<1x1x16xf32, #tpu.memory_space<vmem>>, vector<1x1x16xf32>
    %35 = vector.shape_cast %34 : vector<1x1x16xf32> to vector<16xf32>
    %36 = vector.shape_cast %33 : vector<16xf32> to vector<1x1x16xf32>
    tpu.vector_store %arg7[%c0_19, %c0_20, %c0_21], %36 {strides = array<i32>} : memref<1x1x16xf32, #tpu.memory_space<vmem>>, vector<1x1x16xf32>,
    return
  }
  func.func @transform_0(%arg0: i32) -> (i32, i32) {
    %c0_i32 = arith.constant 0 : i32
    %c0_i32_0 = arith.constant 0 : i32
    return %arg0, %c0_i32 : i32, i32
  }
  func.func @transform_1(%arg0: i32) -> (i32, i32) {
    %c0_i32 = arith.constant 0 : i32
    %c0_i32_0 = arith.constant 0 : i32
    return %arg0, %c0_i32 : i32, i32
  }
  func.func @transform_2(%arg0: i32) -> (i32, i32) {
    %c0_i32 = arith.constant 0 : i32
    %c0_i32_0 = arith.constant 0 : i32
    %c0_i32_1 = arith.constant 0 : i32
    return %c0_i32, %c0_i32_0 : i32, i32
  }
  func.func @transform_3(%arg0: i32) -> (i32, i32) {
    %c0_i32 = arith.constant 0 : i32
    %c0_i32_0 = arith.constant 0 : i32
    %c0_i32_1 = arith.constant 0 : i32
    return %c0_i32, %c0_i32_0 : i32, i32
  }
  func.func @transform_4(%arg0: i32) -> (i32, i32) {
    %c0_i32 = arith.constant 0 : i32
    %c0_i32_0 = arith.constant 0 : i32
    %c0_i32_1 = arith.constant 0 : i32
    return %c0_i32, %c0_i32_0 : i32, i32
  }
  func.func @transform_5(%arg0: i32) -> (i32, i32) {
    %c0_i32 = arith.constant 0 : i32
    %c0_i32_0 = arith.constant 0 : i32
    %c0_i32_1 = arith.constant 0 : i32
    return %c0_i32, %c0_i32_0 : i32, i32
  }
  func.func @transform_6(%arg0: i32) -> (i32, i32, i32) {
    %c0_i32 = arith.constant 0 : i32
    %c0_i32_0 = arith.constant 0 : i32
    %c0_i32_1 = arith.constant 0 : i32
    return %arg0, %c0_i32, %c0_i32_0 : i32, i32, i32
  }
}

</mosaic_0001>

<bundles_post_ra>
// kernel: tpu_custom_call.1
= control target key start
LH: loop header
LB: loop body
LE: loop exit
PB: predicated region body
PF: predicated region fallthrough
CT: control target
= control target key end

     0   :  { %11 = vsyncpa [#allocation3], 0  ;;  %s805_s0 = inlined_call_operand.vmem [shape: f32[32,16], index: 0, kind: input, shape index: {}]   ;;  %s806_s1 = inlined_call_operand.vmem [shape: f32[32,64], index: 1, kind: input, shape index: {}]   ;;  %s807_s2 = inlined_call_operand.vmem [shape: f32[16,32], index: 2, kind: input, shape index: {}]   ;;  %s808_s3 = inlined_call_operand.vmem [shape: f32[64,32], index: 3, kind: input, shape index: {}]   ;;  %s809_s4 = inlined_call_operand.vmem [shape: f32[1,32], index: 4, kind: input, shape index: {}]   ;;  %s810_s5 = inlined_call_operand.vmem [shape: f32[1,32], index: 5, kind: input, shape index: {}]   ;;  %s811_s6 = inlined_call_operand.hbm [shape: f32[2,1,16], index: 6, kind: output, shape index: {}]  }
   0x1   :  { %13 = vsyncpa [#allocation3 + $0x1], 0  ;;  %s674_s21 = smov 0   ;;  %s676_s22 = smov 0  }
   0x2   :  { %s678_s23 = smov 0   ;;  %s680_s24 = smov 0  }
   0x3 LB: > { %s695_s25 = sadd.s32 4294967295, %s637_s24   ;;  %s508_s26 = sadd.s32 4294967294, %s637_s24   ;;  %s637_s24 = sphi %s680_s24, %s817_s24   ;;  %s633_s23 = sphi %s678_s23, %s816_s23   ;;  %s629_s22 = sphi %s676_s22, %s815_s22   ;;  %s625_s21 = sphi %s674_s21, %s814_s21  }
   0x4   : > { %s699_s27 = sadd.s32 1, %s637_s24   ;;  %s162_s28 = sadd.s32 1, %s633_s23 }
   0x5   : > { %s159_s29 = ssub.s32 %s637_s24, %s699_s27  ;;  %p172_p0 = scmp.ne.s32.totalorder %s633_s23, %s629_s22 }
   0x6   : > { %p160_p1 = scmp.eq.s32.totalorder %s159_s29, 0  ;;  %p173_p2 = scmp.eq.s32.totalorder %s695_s25, 1 }
   0x7   : > { %p178_p3 = scmp.ne.s32.totalorder %s629_s22, %s625_s21  ;;  %p179_p4 = scmp.eq.s32.totalorder %s508_s26, 1 }
   0x8   : > { %s710_s30 = scalar_select %p160_p1, %s633_s23, %s162_s28  }
   0x9   : > { %p712_p5 = por %p173_p2, %p172_p0  ;;  %p716_p6 = por %p179_p4, %p178_p3 }
   0xa   : > { %p511_p7 = scmp.ge.s32.totalorder %s637_s24, 1  ;;  %p227_p8 = scmp.lt.s32.totalorder %s637_s24, 3 }
   0xc   : > { %p228_p9 = pnand %p511_p7, %p227_p8 }
   0xd   : > { %s512_s13 = sshll.u32 (!%p228_p9), %s695_s25, 1  ;;  %s259_s11 = sand.u32 (!%p228_p9), 1, %s629_s22  }
   0xe   : > { %231 = sbr.rel (%p228_p9) target bundleno = 445 (0x1bd), region = 44  ;;  %p262_p10 = scmp.lt.s32.totalorder (!%p228_p9), %s512_s13, 3 }
   0xf   : > { %s437_s15 = scalar_lea.hbm (!%p228_p9), %s811_s6, %s695_s25  ;;  %s429_s18 = scalar_lea.sflag (!%p228_p9), [#allocation3], %s259_s11 }
  0x10   : > { %s441_s17 = sshll.u32 (!%p228_p9), %s437_s15, 4  ;;  %s442_s17 = int_to_ptr.hbm [resolvable:$true] %s441_s17 }
  0x13   : > { %v286_v0 = vld [vmem:[%s808_s3 + $0x38] sm:$0xff]  ;;  %v285_v1 = vld [vmem:[%s808_s3 + $0x30] sm:$0xff]  ;;  %v284_v2 = vld [vmem:[%s808_s3 + $0x28] sm:$0xff]  ;;  %s819_s13 = smov (!%p262_p10, %s512_s13), 3  ;;  %vm317_vm0 = vcmask 130048   ;;  %vm287_vm1 = vcmask 523264  }
  0x14   : > { %302 = vmatpush.msra.mxu0 %v286_v0  ;;  %522 = vmatpush.msra.mxu2 %v286_v0  ;;  %v276_v3 = vld [vmem:[%s807_s2 + $0x8] sm:$0xff]  ;;  %v275_v4 = vld [vmem:[%s807_s2] sm:$0xff]  ;;  %s513_s28 = sshll.u32 %s819_s13, 3  ;;  %v282_v6 = vld [vmem:[%s808_s3 + $0x18] sm:$0xff]  ;;  %vm353_vm2 = vcmask 261120   ;;  %s260_s13 = scalar_lea.vmem [#allocation2], %s259_s11 }
  0x15   : > { %v283_v5 = vld [vmem:[%s808_s3 + $0x20] sm:$0xff]  ;;  %338 = vmatpush.msra.mxu1 %v276_v3  ;;  %s265_s12 = scalar_lea.vmem %s805_s0, %s513_s28  ;;  %v281_v8 = vld [vmem:[%s808_s3 + $0x10] sm:$0xff]  ;;  %v280_v9 = vld [vmem:[%s808_s3 + $0x8] sm:$0xff]  ;;  %s271_s19 = scalar_lea.vmem %s806_s1, %s513_s28  ;;  %vm423_vm9 = vcmask 130112   ;;  %vm426_vm10 = vcmask 122880  }
  0x16   : > { %303 = vmatpush.msra.mxu0 %v285_v1  ;;  %523 = vmatpush.msra.mxu2 %v285_v1  ;;  %v273_v7 = vld [vmem:[%s265_s12] sm:$0xff]  ;;  %v278_v12 = vld [vmem:[%s271_s19 + $0x8] sm:$0xff]  ;;  %s439_s16 = sshll.u32 %s260_s13, 4  ;;  %s595_s28 = scalar_lea.hbm %s811_s6, 2  ;;  %s440_s16 = int_to_ptr.vmem [resolvable:$true] %s439_s16 }
  0x17   : > { %339 = vmatpush.msra.mxu1 %v275_v4  ;;  %v279_v10 = vld [vmem:[%s808_s3] sm:$0xff]  ;;  %v274_v13 = vld [vmem:[%s265_s12 + $0x8] sm:$0xff]  ;;  %v418_v4 = vlaneseq }
  0x18   : > { %304 = vmatpush.msra.mxu0 %v284_v2  ;;  %524 = vmatpush.msra.mxu2 %v284_v2  ;;  %v277_v11 = vld [vmem:[%s271_s19] sm:$0xff]  ;;  %s589_s19 = sshra.s32 %s442_s17, 4  ;;  %s590_s19 = int_to_ptr.hbm [resolvable:$true] %s589_s19 }
  0x19   : > { %518 = vmatmul.msk.f32.vlgmr.msra.gmra.mxu1 %vm317_vm0, %v273_v7  ;;  %v569_v15 = vld [vmem:[%s809_s4] ss:$0 sm:$0xff]  ;;  %s591_s20 = scalar_lea.hbm %s590_s19, 1  ;;  %p596_p0 = scmp.lt.s32.totalorder %s590_s19, %s811_s6 }
  0x1a   : > { %305 = vmatpush.msra.mxu0 %v283_v5  ;;  %525 = vmatpush.msra.mxu2 %v283_v5  ;;  %v570_v55 = vld [vmem:[%s810_s5] ss:$0 sm:$0xff]  ;;  %p592_p11 = scmp.ne.s32.totalorder %s590_s19, %s591_s20  ;;  %p597_p1 = scmp.lt.s32.totalorder %s595_s28, %s591_s20 }
  0x1c   : > { %306 = vmatpush.msra.mxu0 %v282_v6  ;;  %526 = vmatpush.msra.mxu2 %v282_v6  ;;  %v419_v6 = vand.u32 127, %v418_v4  ;;  %p593_p12 = pnand %p592_p11, %p712_p5  ;;  %p598_p2 = por %p597_p1, %p596_p0 }
  0x1e   : > { %307 = vmatpush.msra.mxu0 %v281_v8  ;;  %527 = vmatpush.msra.mxu2 %v281_v8  ;;  %v421_v7 = vadd.s32 4294967288, %v419_v6  ;;  %p594_p13 = pneg %p593_p12 }
  0x20   : > { %308 = vmatpush.msra.mxu0 %v280_v9  ;;  %528 = vmatpush.msra.mxu2 %v280_v9  ;;  %p599_p3 = pnand %p598_p2, %p594_p13 }
  0x21   : > { %519 = vmatmul.msk.f32.gmra.mxu1 %vm317_vm0, %v274_v13 }
  0x22   : > { %309 = vmatpush.msra.mxu0 %v279_v10  ;;  %529 = vmatpush.msra.mxu2 %v279_v10 }
  0x23   : > { %516 = vmatmul.msk.f32.vlgmr.msra.gmra.mxu0 %vm287_vm1, %v277_v11  ;;  %517 = vmatmul.msk.f32.vlgmr.msra.gmra.mxu2 %vm287_vm1, %v278_v12 }
  0x96   : > { %v341_v14 = vpop.f32.mrf.mxu1 }
  0x9e   : > { %v344_v19 = vpop.f32.mrf.mxu1 }
  0xa0   : > { %v311_v16 = vpop.f32.mrf.mxu0 }
  0xa1   : > { %v342_v17 = vadd.f32 %v341_v14, %v311_v16 }
  0xa3   : > { %v351_v18 = vadd.f32 %v569_v15, %v342_v17 }
  0xa5   : > { %v354_v20 = vsel %vm353_vm2, %v351_v18, 0.0  ;;  %v362_v21 = vmul.f32 %v351_v18, %v351_v18 }
  0xa6   : > { %355 = vadd.xlane.f32.xlu0 %v354_v20  ;;  %v314_v22 = vpop.f32.mrf.mxu2 }
  0xa7   : > { %v345_v23 = vadd.f32 %v344_v19, %v314_v22  ;;  %v364_v24 = vsel %vm353_vm2, %v362_v21, 0.0 }
  0xa8   : > { %365 = vadd.xlane.f32.xlu1 %v364_v24 }
  0xa9   : > { %v352_v25 = vadd.f32 %v569_v15, %v345_v23 }
  0xab   : > { %v357_v26 = vsel %vm353_vm2, %v352_v25, 0.0  ;;  %v363_v27 = vmul.f32 %v352_v25, %v352_v25 }
  0xad   : > { %v367_v28 = vsel %vm353_vm2, %v363_v27, 0.0 }
  0xae   : > { %358 = vadd.xlane.f32.xlu0 %v357_v26 }
  0xb0   : > { %368 = vadd.xlane.f32.xlu1 %v367_v28 }
 0x119   : > { %v356_v29 = vpop.xlane.xlu0 %355 }
 0x11a   : > { %v360_v30 = vmul.f32 0.03125, %v356_v29 }
 0x11b   : > { %v366_v31 = vpop.xlane.xlu1 %365 }
 0x11c   : > { %v372_v32 = vmul.f32 %v360_v30, %v360_v30  ;;  %v370_v33 = vmul.f32 0.03125, %v366_v31  ;;  %v376_v51 = vsub.f32 %v351_v18, %v360_v30 }
 0x11e   : > { %v374_v34 = vsub.f32 %v370_v33, %v372_v32 }
 0x120   : > { %v378_v35 = vadd.f32 1e-05, %v374_v34 }
 0x121   : > { %v359_v36 = vpop.xlane.xlu0 %358 }
 0x122   : > { %571 = vrsqrt.f32 %v378_v35  ;;  %v361_v37 = vmul.f32 0.03125, %v359_v36  ;;  %vm386_vm4 = vweird.f32 %v378_v35 }
 0x123   : > { %v369_v38 = vpop.xlane.xlu1 %368 }
 0x124   : > { %v373_v39 = vmul.f32 %v361_v37, %v361_v37  ;;  %v371_v40 = vmul.f32 0.03125, %v369_v38  ;;  %v377_v61 = vsub.f32 %v352_v25, %v361_v37 }
 0x126   : > { %v375_v41 = vsub.f32 %v371_v40, %v373_v39 }
 0x128   : > { %v572_v42 = vpop.eup %571  ;;  %v379_v43 = vadd.f32 1e-05, %v375_v41 }
 0x129   : > { %v381_v44 = vmul.f32 %v572_v42, %v378_v35  ;;  %vm387_vm3 = vweird.f32 %v572_v42 }
 0x12a   : > { %573 = vrsqrt.f32 %v379_v43  ;;  %vm388_vm5 = vmor %vm386_vm4, %vm387_vm3  ;;  %vm396_vm7 = vweird.f32 %v379_v43 }
 0x12b   : > { %v382_v45 = vmul.f32 %v572_v42, %v381_v44 }
 0x12d   : > { %v383_v46 = vmul.f32 0.5, %v382_v45 }
 0x12f   : > { %v384_v47 = vsub.f32 1.5, %v383_v46 }
 0x130   : > { %v574_v48 = vpop.eup %573 }
 0x131   : > { %v391_v49 = vmul.f32 %v574_v48, %v379_v43  ;;  %v385_v50 = vmul.f32 %v572_v42, %v384_v47  ;;  %vm397_vm6 = vweird.f32 %v574_v48 }
 0x132   : > { %vm398_vm8 = vmor %vm396_vm7, %vm397_vm6 }
 0x133   : > { %v392_v52 = vmul.f32 %v574_v48, %v391_v49  ;;  %v389_v53 = vsel %vm388_vm5, %v572_v42, %v385_v50 }
 0x134   : > { %v400_v54 = vmul.f32 %v389_v53, %v376_v51 }
 0x135   : > { %v393_v56 = vmul.f32 0.5, %v392_v52 }
 0x136   : > { %v402_v57 = vmax.f32 %v400_v54, 0.0 }
 0x137   : > { %v394_v58 = vsub.f32 1.5, %v393_v56 }
 0x138   : > { %v408_v59 = vmul.f32 %v570_v55, %v402_v57 }
 0x139   : > { %v395_v60 = vmul.f32 %v574_v48, %v394_v58 }
 0x13a   : > { %v410_v62 = vsel %vm353_vm2, %v408_v59, 0.0 }
 0x13b   : > { %411 = vadd.xlane.f32.xlu2 %v410_v62  ;;  %v399_v63 = vsel %vm398_vm8, %v574_v48, %v395_v60 }
 0x13c   : > { %v401_v0 = vmul.f32 %v399_v63, %v377_v61 }
 0x13e   : > { %v403_v1 = vmax.f32 %v401_v0, 0.0 }
 0x140   : > { %v409_v2 = vmul.f32 %v570_v55, %v403_v1 }
 0x142   : > { %v413_v3 = vsel %vm353_vm2, %v409_v2, 0.0 }
 0x143   : > { %414 = vadd.xlane.f32.xlu2 %v413_v3 }
 0x1ae   : > { %v412_v5 = vpop.xlane.xlu2 %411 }
 0x1af   : > { %v420_v9 = vperm.slane %v412_v5, %v419_v6 }
 0x1b6   : > { %v415_v8 = vpop.xlane.xlu2 %414 }
 0x1b7   : > { %v422_v10 = vperm.slane %v415_v8, %v421_v7 }
 0x1b9   : > { %v424_v11 = vsel %vm423_vm9, %v422_v10, %v420_v9 }
 0x1ba   : > { %427 = vst.msk [vmem:[%s260_s13] sm:$0x1] %vm426_vm10, %v424_v11 }
 0x1bb   : > { %602 = shalt.err (!%p599_p3)
}
 0x1bc   : > { %530 = dma.vmem_to_hbm [thread:$0]  (%p712_p5), %s440_s16, 16, %s442_s17, %s429_s18  }
 0x1bd PF: > { %p536_p4 = scmp.ge.s32.totalorder %s637_s24, 2  ;;  %s453_s10 = sand.u32 1, %s625_s21  }
 0x1be   : > { %s454_s11 = scalar_lea.sflag [#allocation3], %s453_s10 }
 0x1bf   : > { %p533_p7 = pnand %p536_p4, %p716_p6 }
 0x1c1   : > { %p534_p8 = pneg %p533_p7 }
 0x1c3   : > { %620 = dma.done.wait (%p534_p8), %s454_s11, 16  }
 0x1c4   : > { %622 = vsyncadd (%p534_p8), %s454_s11, 4294967280  ;;  %p16_p9 = scmp.ge.s32.totalorder %s699_s27, 4   ;;  %s814_s21 = smov %s629_s22 }
 0x1c5   : > { %s815_s22 = smov %s633_s23  ;;  %s816_s23 = smov %s710_s30 }
 0x1c6   : > { %s817_s24 = smov %s699_s27  ;;  %18 = sbr.rel (!%p16_p9) target bundleno = 3 (0x3), region = 82 }
 0x1cb   :  { %459 = vsyncpa [#allocation3], 1 }
 0x1cc   :  { %461 = vsyncpa [#allocation3 + $0x1], 1 }

</bundles_post_ra>
